<compile_context>
chip_gen: v7x
topology: tpu7x:2x2x1
jax: 0.10.0
libtpu: 0.0.40
codegen_flags: <defaults>
</compile_context>

<pallas_src>
import functools

import jax
import jax.numpy as jnp
from jax import lax
from jax.experimental import pallas as pl
from jax.experimental.pallas import tpu as pltpu


def _conv_bn_relu_kernel(x_ref, w_ref, mask_ref, gb_ref, o_ref, acc_ref,
                         *, H, W, KH, KW, eps):
    """Fused 3x3 'same' conv + BN(train) + ReLU; one image per grid step.

    x_ref   : (1, Cin_pad, H*W)        image n, spatial on the lane axis
    w_ref   : (Cout, KH*KW*Cin_pad)    flattened conv weights
    mask_ref: (KH*KW, H*W)             f32 boundary masks (zero padding)
    gb_ref  : (Cout, 2)                col 0 = gamma, col 1 = beta
    o_ref   : (Cout, N*H*W)            final activations (written on last step)
    acc_ref : (Cout, N*H*W)            f32 VMEM scratch with all conv results
    """
    n = pl.program_id(0)
    num = pl.num_programs(0)
    HW = H * W
    ph, pw = (KH - 1) // 2, (KW - 1) // 2

    x = x_ref[0]                                            # (Cin_pad, HW)

    # im2col, spatial-lane-dense: each tap is a lane roll (XLU slot) of the
    # image, times a precomputed edge mask.  tap[p] = x[p + off] (zero-padded).
    taps = []
    for kh in range(KH):
        for kw in range(KW):
            off = (kh - ph) * W + (kw - pw)
            t = x if off == 0 else pltpu.roll(x, shift=(-off) % HW, axis=1)
            tap_idx = kh * KW + kw
            taps.append(t * mask_ref[tap_idx:tap_idx + 1, :])
    patches = jnp.concatenate(taps, axis=0)                 # (KH*KW*Cin_pad, HW)

    # Single MXU contraction: (Cout, K) @ (K, HW), K = KH*KW*Cin_pad.
    conv = jnp.dot(w_ref[...], patches,
                   preferred_element_type=jnp.float32)      # (Cout, HW)

    start = n * HW
    if HW % 128 == 0:
        start = pl.multiple_of(start, 128)
    acc_ref[:, pl.ds(start, HW)] = conv

    # Last step: BN batch statistics over all N*H*W positions, folded
    # scale/shift + ReLU, single lane-dense output write.
    @pl.when(n == num - 1)
    def _():
        y = acc_ref[...]                                    # (Cout, N*HW)
        mean = jnp.mean(y, axis=1, keepdims=True)
        var = jnp.mean(jnp.square(y - mean), axis=1, keepdims=True)
        gamma = gb_ref[:, 0:1]
        beta = gb_ref[:, 1:2]
        scale = gamma * lax.rsqrt(var + eps)
        shift = beta - mean * scale
        o_ref[...] = jnp.maximum(y * scale + shift, 0.0).astype(o_ref.dtype)


def conv_block_forward(x_nchw, w_oihw, bias, gamma, beta, eps=1e-5):
    """Forward pass of conv_block.  Input/output are NCHW (PyTorch layout)."""
    # Conv bias is exactly cancelled by the training-mode BN mean subtraction,
    # so the returned activations are unchanged without it.
    # TODO(synk): re-add bias if BN running_mean/running_var updates are needed.
    del bias
    N, Cin, H, W = x_nchw.shape
    Cout, _, KH, KW = w_oihw.shape
    HW = H * W
    ph, pw = (KH - 1) // 2, (KW - 1) // 2

    # Pad Cin to the f32 sublane tile so in-kernel tap concat is aligned and
    # the MXU K dim is KH*KW*Cin_pad (review: pad channels to improve K-fill).
    Cin_pad = ((Cin + 7) // 8) * 8

    # Input as (N, Cin_pad, H*W): NCHW is already channel-major / spatial-last,
    # so this is a reshape + cheap channel pad (no spatial padded copy in HBM).
    x_flat = x_nchw.reshape(N, Cin, HW).astype(jnp.float32)
    x_flat = jnp.pad(x_flat, ((0, 0), (0, Cin_pad - Cin), (0, 0)))

    # Weights flattened to (Cout, KH*KW*Cin_pad), tap-major / channel-minor,
    # matching the patch row order built in the kernel.
    w_k = jnp.transpose(w_oihw, (0, 2, 3, 1)).astype(jnp.float32)
    w_k = jnp.pad(w_k, ((0, 0), (0, 0), (0, 0), (0, Cin_pad - Cin)))
    w_flat = w_k.reshape(Cout, KH * KW * Cin_pad)

    # Precomputed "same" zero-padding masks, one (H*W,) row per tap.
    pos = jnp.arange(HW, dtype=jnp.int32)
    r, c = pos // W, pos % W
    mask_rows = []
    for kh in range(KH):
        for kw in range(KW):
            rr, cc = r + (kh - ph), c + (kw - pw)
            valid = (rr >= 0) & (rr < H) & (cc >= 0) & (cc < W)
            mask_rows.append(valid.astype(jnp.float32))
    mask = jnp.stack(mask_rows, axis=0)                     # (KH*KW, HW)

    # gamma/beta packed into one small operand.
    gb = jnp.stack([gamma.astype(jnp.float32),
                    beta.astype(jnp.float32)], axis=1)      # (Cout, 2)

    y_t = pl.pallas_call(
        functools.partial(_conv_bn_relu_kernel, H=H, W=W, KH=KH, KW=KW, eps=eps),
        out_shape=jax.ShapeDtypeStruct((Cout, N * HW), jnp.float32),
        grid=(N,),
        in_specs=[
            pl.BlockSpec((1, Cin_pad, HW), lambda n: (n, 0, 0)),
            pl.BlockSpec((Cout, KH * KW * Cin_pad), lambda n: (0, 0)),
            pl.BlockSpec((KH * KW, HW), lambda n: (0, 0)),
            pl.BlockSpec((Cout, 2), lambda n: (0, 0)),
        ],
        out_specs=pl.BlockSpec((Cout, N * HW), lambda n: (0, 0)),
        scratch_shapes=[pltpu.VMEM((Cout, N * HW), jnp.float32)],
        compiler_params=pltpu.CompilerParams(
            dimension_semantics=("arbitrary",)),
    )(x_flat, w_flat, mask, gb)

    # (Cout, N*H*W) -> NCHW: leading-dim transpose only (cheap, done by XLA).
    return jnp.transpose(y_t.reshape(Cout, N, H, W), (1, 0, 2, 3))


def _reference(x_nchw, w_oihw, bias, gamma, beta, eps=1e-5):
    """Pure-JAX reference (XLA conv, with bias) for correctness checking."""
    x = jnp.transpose(x_nchw, (0, 2, 3, 1))
    w = jnp.transpose(w_oihw, (2, 3, 1, 0))
    dn = lax.conv_dimension_numbers(x.shape, w.shape, ("NHWC", "HWIO", "NHWC"))
    conv = lax.conv_general_dilated(x, w, (1, 1), "SAME",
                                    dimension_numbers=dn) + bias
    mean = conv.mean(axis=(0, 1, 2))
    var = ((conv - mean) ** 2).mean(axis=(0, 1, 2))
    y = (conv - mean) * (gamma / jnp.sqrt(var + eps)) + beta
    y = jnp.maximum(y, 0.0)
    return jnp.transpose(y, (0, 3, 1, 2))


if __name__ == "__main__":
    # Small shapes consistent with the module: batch=2, Cin=4, Cout=8, 16x16.
    N, Cin, Cout, H, W, K = 2, 4, 8, 16, 16, 3

    key = jax.random.PRNGKey(0)
    kx, kw, kb, kg, kbeta = jax.random.split(key, 5)

    x = jax.random.normal(kx, (N, Cin, H, W), dtype=jnp.float32)   # NCHW input

    # Conv2d init: uniform(-1/sqrt(fan_in), 1/sqrt(fan_in)), fan_in = Cin*K*K
    fan_in = Cin * K * K
    bound = 1.0 / jnp.sqrt(float(fan_in))
    w_oihw = jax.random.uniform(kw, (Cout, Cin, K, K), jnp.float32, -bound, bound)
    conv_bias = jax.random.uniform(kb, (Cout,), jnp.float32, -bound, bound)

    # BatchNorm2d affine params (perturbed from the 1/0 defaults so the
    # broadcast paths are actually exercised; still deterministic).
    gamma = 1.0 + 0.1 * jax.random.normal(kg, (Cout,), jnp.float32)
    beta = 0.1 * jax.random.normal(kbeta, (Cout,), jnp.float32)

    out = conv_block_forward(x, w_oihw, conv_bias, gamma, beta)
    out = jax.block_until_ready(out)

    ref = _reference(x, w_oihw, conv_bias, gamma, beta)
    assert out.shape == (N, Cout, H, W), out.shape
    assert jnp.allclose(out, ref, atol=1e-4, rtol=1e-4), float(
        jnp.max(jnp.abs(out - ref)))

    print("KERNEL_OK")
</pallas_src>

<mosaic_0001>
module attributes {stable_mosaic.version = 11 : i64} {
  func.func @_conv_bn_relu_kernel(%arg0: i32, %arg1: memref<1x8x256xf32, #tpu.memory_space<vmem>>, %arg2: memref<8x72xf32, #tpu.memory_space<vmem>>, %arg3: memref<9x256xf32, #tpu.memory_space<vmem>>, %arg4: memref<8x2xf32, #tpu.memory_space<vmem>>, %arg5: memref<8x512xf32, #tpu.memory_space<vmem>>, %arg6: memref<8x512xf32, #tpu.memory_space<vmem>>) attributes {dimension_semantics = [#tpu.dimension_semantics<arbitrary>], iteration_bounds = array<i64: 2>, scalar_prefetch = 0 : i64, scratch_operands = 1 : i64, tpu.core_type = #tpu.core_type<tc>, window_params = [{transform_indices = @transform_0, window_bounds = array<i64: 1, 8, 256>}, {pipeline_mode = #tpu.pipeline_mode<synchronous>, transform_indices = @transform_1, window_bounds = array<i64: 8, 72>}, {pipeline_mode = #tpu.pipeline_mode<synchronous>, transform_indices = @transform_2, window_bounds = array<i64: 9, 256>}, {pipeline_mode = #tpu.pipeline_mode<synchronous>, transform_indices = @transform_3, window_bounds = array<i64: 8, 2>}, {pipeline_mode = #tpu.pipeline_mode<synchronous>, transform_indices = @transform_4, window_bounds = array<i64: 8, 512>}]} {
    %c0 = arith.constant 0 : index
    %c0_0 = arith.constant 0 : index
    %c0_1 = arith.constant 0 : index
    %0 = vector.load %arg1[%c0, %c0_0, %c0_1] : memref<1x8x256xf32, #tpu.memory_space<vmem>>, vector<1x8x256xf32>
    %1 = vector.shape_cast %0 : vector<1x8x256xf32> to vector<8x256xf32>
    %c17_i32 = arith.constant 17 : i32
    %2 = tpu.dynamic_rotate %1 by %c17_i32 dim 1 : vector<8x256xf32>, i32 -> vector<8x256xf32>
    %c0_2 = arith.constant 0 : index
    %c0_3 = arith.constant 0 : index
    %3 = vector.load %arg3[%c0_2, %c0_3] : memref<9x256xf32, #tpu.memory_space<vmem>>, vector<1x256xf32>
    %4 = vector.broadcast %3 : vector<1x256xf32> to vector<8x256xf32>
    %5 = arith.mulf %2, %4 : vector<8x256xf32>
    %c16_i32 = arith.constant 16 : i32
    %6 = tpu.dynamic_rotate %1 by %c16_i32 dim 1 : vector<8x256xf32>, i32 -> vector<8x256xf32>
    %c1 = arith.constant 1 : index
    %c0_4 = arith.constant 0 : index
    %7 = vector.load %arg3[%c1, %c0_4] : memref<9x256xf32, #tpu.memory_space<vmem>>, vector<1x256xf32>
    %8 = vector.broadcast %7 : vector<1x256xf32> to vector<8x256xf32>
    %9 = arith.mulf %6, %8 : vector<8x256xf32>
    %c15_i32 = arith.constant 15 : i32
    %10 = tpu.dynamic_rotate %1 by %c15_i32 dim 1 : vector<8x256xf32>, i32 -> vector<8x256xf32>
    %c2 = arith.constant 2 : index
    %c0_5 = arith.constant 0 : index
    %11 = vector.load %arg3[%c2, %c0_5] : memref<9x256xf32, #tpu.memory_space<vmem>>, vector<1x256xf32>
    %12 = vector.broadcast %11 : vector<1x256xf32> to vector<8x256xf32>
    %13 = arith.mulf %10, %12 : vector<8x256xf32>
    %c1_i32 = arith.constant 1 : i32
    %14 = tpu.dynamic_rotate %1 by %c1_i32 dim 1 : vector<8x256xf32>, i32 -> vector<8x256xf32>
    %c3 = arith.constant 3 : index
    %c0_6 = arith.constant 0 : index
    %15 = vector.load %arg3[%c3, %c0_6] : memref<9x256xf32, #tpu.memory_space<vmem>>, vector<1x256xf32>
    %16 = vector.broadcast %15 : vector<1x256xf32> to vector<8x256xf32>
    %17 = arith.mulf %14, %16 : vector<8x256xf32>
    %c4 = arith.constant 4 : index
    %c0_7 = arith.constant 0 : index
    %18 = vector.load %arg3[%c4, %c0_7] : memref<9x256xf32, #tpu.memory_space<vmem>>, vector<1x256xf32>
    %19 = vector.broadcast %18 : vector<1x256xf32> to vector<8x256xf32>
    %20 = arith.mulf %1, %19 : vector<8x256xf32>
    %c255_i32 = arith.constant 255 : i32
    %21 = tpu.dynamic_rotate %1 by %c255_i32 dim 1 : vector<8x256xf32>, i32 -> vector<8x256xf32>
    %c5 = arith.constant 5 : index
    %c0_8 = arith.constant 0 : index
    %22 = vector.load %arg3[%c5, %c0_8] : memref<9x256xf32, #tpu.memory_space<vmem>>, vector<1x256xf32>
    %23 = vector.broadcast %22 : vector<1x256xf32> to vector<8x256xf32>
    %24 = arith.mulf %21, %23 : vector<8x256xf32>
    %c241_i32 = arith.constant 241 : i32
    %25 = tpu.dynamic_rotate %1 by %c241_i32 dim 1 : vector<8x256xf32>, i32 -> vector<8x256xf32>
    %c6 = arith.constant 6 : index
    %c0_9 = arith.constant 0 : index
    %26 = vector.load %arg3[%c6, %c0_9] : memref<9x256xf32, #tpu.memory_space<vmem>>, vector<1x256xf32>
    %27 = vector.broadcast %26 : vector<1x256xf32> to vector<8x256xf32>
    %28 = arith.mulf %25, %27 : vector<8x256xf32>
    %c240_i32 = arith.constant 240 : i32
    %29 = tpu.dynamic_rotate %1 by %c240_i32 dim 1 : vector<8x256xf32>, i32 -> vector<8x256xf32>
    %c7 = arith.constant 7 : index
    %c0_10 = arith.constant 0 : index
    %30 = vector.load %arg3[%c7, %c0_10] : memref<9x256xf32, #tpu.memory_space<vmem>>, vector<1x256xf32>
    %31 = vector.broadcast %30 : vector<1x256xf32> to vector<8x256xf32>
    %32 = arith.mulf %29, %31 : vector<8x256xf32>
    %c239_i32 = arith.constant 239 : i32
    %33 = tpu.dynamic_rotate %1 by %c239_i32 dim 1 : vector<8x256xf32>, i32 -> vector<8x256xf32>
    %c8 = arith.constant 8 : index
    %c0_11 = arith.constant 0 : index
    %34 = vector.load %arg3[%c8, %c0_11] : memref<9x256xf32, #tpu.memory_space<vmem>>, vector<1x256xf32>
    %35 = vector.broadcast %34 : vector<1x256xf32> to vector<8x256xf32>
    %36 = arith.mulf %33, %35 : vector<8x256xf32>
    %37 = tpu.concatenate %5, %9, %13, %17, %20, %24, %28, %32, %36 in 0 : vector<8x256xf32>, vector<8x256xf32>, vector<8x256xf32>, vector<8x256xf32>, vector<8x256xf32>, vector<8x256xf32>, vector<8x256xf32>, vector<8x256xf32>, vector<8x256xf32> -> vector<72x256xf32>
    %c0_12 = arith.constant 0 : index
    %c0_13 = arith.constant 0 : index
    %38 = vector.load %arg2[%c0_12, %c0_13] : memref<8x72xf32, #tpu.memory_space<vmem>>, vector<8x72xf32>
    %cst = arith.constant dense<0.000000e+00> : vector<8x256xf32>
    %39 = tpu.matmul %38, %37, %cst {dimension_numbers = #tpu.dot_dimension_numbers<[1], [0], [0], [1], [0, 0, 1, 1], [], []>} : vector<8x72xf32>, vector<72x256xf32>, vector<8x256xf32> -> vector<8x256xf32>
    %c256_i32 = arith.constant 256 : i32
    %40 = arith.muli %arg0, %c256_i32 : i32
    %41 = tpu.assume_multiple %40, 128 : i32
    %c0_14 = arith.constant 0 : index
    %42 = arith.index_cast %41 : i32 to index
    %43 = vector.load %arg6[%c0_14, %42] : memref<8x512xf32, #tpu.memory_space<vmem>>, vector<8x256xf32>
    tpu.vector_store %arg6[%c0_14, %42], %39 {strides = array<i32>} : memref<8x512xf32, #tpu.memory_space<vmem>>, vector<8x256xf32>,
    %c1_i32_15 = arith.constant 1 : i32
    %44 = arith.cmpi eq, %arg0, %c1_i32_15 : i32
    %45 = arith.extui %44 : i1 to i32
    %c0_i32 = arith.constant 0 : i32
    %46 = arith.cmpi ne, %45, %c0_i32 : i32
    scf.if %46 {
      %c0_16 = arith.constant 0 : index
      %c0_17 = arith.constant 0 : index
      %47 = vector.load %arg6[%c0_16, %c0_17] : memref<8x512xf32, #tpu.memory_space<vmem>>, vector<8x512xf32>
      %cst_18 = arith.constant dense<0.000000e+00> : vector<8xf32>
      %48 = vector.multi_reduction <add>, %47, %cst_18 [1] : vector<8x512xf32> to vector<8xf32>
      %49 = vector.shape_cast %48 : vector<8xf32> to vector<8x1xf32>
      %cst_19 = arith.constant 5.120000e+02 : f32
      %50 = vector.broadcast %cst_19 : f32 to vector<8x1xf32>
      %51 = arith.divf %49, %50 : vector<8x1xf32>
      %52 = vector.broadcast %51 : vector<8x1xf32> to vector<8x512xf32>
      %53 = arith.subf %47, %52 : vector<8x512xf32>
      %54 = arith.mulf %53, %53 : vector<8x512xf32>
      %cst_20 = arith.constant dense<0.000000e+00> : vector<8xf32>
      %55 = vector.multi_reduction <add>, %54, %cst_20 [1] : vector<8x512xf32> to vector<8xf32>
      %56 = vector.shape_cast %55 : vector<8xf32> to vector<8x1xf32>
      %cst_21 = arith.constant 5.120000e+02 : f32
      %57 = vector.broadcast %cst_21 : f32 to vector<8x1xf32>
      %58 = arith.divf %56, %57 : vector<8x1xf32>
      %c0_22 = arith.constant 0 : index
      %c0_23 = arith.constant 0 : index
      %59 = vector.load %arg4[%c0_22, %c0_23] : memref<8x2xf32, #tpu.memory_space<vmem>>, vector<8x1xf32>
      %c0_24 = arith.constant 0 : index
      %c1_25 = arith.constant 1 : index
      %60 = vector.load %arg4[%c0_24, %c1_25] : memref<8x2xf32, #tpu.memory_space<vmem>>, vector<8x1xf32>
      %cst_26 = arith.constant 9.99999974E-6 : f32
      %61 = vector.broadcast %cst_26 : f32 to vector<8x1xf32>
      %62 = arith.addf %58, %61 : vector<8x1xf32>
      %63 = math.rsqrt %62 : vector<8x1xf32>
      %64 = arith.mulf %59, %63 : vector<8x1xf32>
      %65 = arith.mulf %51, %64 : vector<8x1xf32>
      %66 = arith.subf %60, %65 : vector<8x1xf32>
      %67 = vector.broadcast %64 : vector<8x1xf32> to vector<8x512xf32>
      %68 = arith.mulf %47, %67 : vector<8x512xf32>
      %69 = vector.broadcast %66 : vector<8x1xf32> to vector<8x512xf32>
      %70 = arith.addf %68, %69 : vector<8x512xf32>
      %cst_27 = arith.constant 0.000000e+00 : f32
      %71 = vector.broadcast %cst_27 : f32 to vector<8x512xf32>
      %72 = arith.maximumf %70, %71 : vector<8x512xf32>
      %c0_28 = arith.constant 0 : index
      %c0_29 = arith.constant 0 : index
      %73 = vector.load %arg5[%c0_28, %c0_29] : memref<8x512xf32, #tpu.memory_space<vmem>>, vector<8x512xf32>
      tpu.vector_store %arg5[%c0_28, %c0_29], %72 {strides = array<i32>} : memref<8x512xf32, #tpu.memory_space<vmem>>, vector<8x512xf32>,
    } else {
    }
    return
  }
  func.func @transform_0(%arg0: i32) -> (i32, i32, i32) {
    %c0_i32 = arith.constant 0 : i32
    %c0_i32_0 = arith.constant 0 : i32
    %c0_i32_1 = arith.constant 0 : i32
    return %arg0, %c0_i32, %c0_i32_0 : i32, i32, i32
  }
  func.func @transform_1(%arg0: i32) -> (i32, i32) {
    %c0_i32 = arith.constant 0 : i32
    %c0_i32_0 = arith.constant 0 : i32
    %c0_i32_1 = arith.constant 0 : i32
    return %c0_i32, %c0_i32_0 : i32, i32
  }
  func.func @transform_2(%arg0: i32) -> (i32, i32) {
    %c0_i32 = arith.constant 0 : i32
    %c0_i32_0 = arith.constant 0 : i32
    %c0_i32_1 = arith.constant 0 : i32
    return %c0_i32, %c0_i32_0 : i32, i32
  }
  func.func @transform_3(%arg0: i32) -> (i32, i32) {
    %c0_i32 = arith.constant 0 : i32
    %c0_i32_0 = arith.constant 0 : i32
    %c0_i32_1 = arith.constant 0 : i32
    return %c0_i32, %c0_i32_0 : i32, i32
  }
  func.func @transform_4(%arg0: i32) -> (i32, i32) {
    %c0_i32 = arith.constant 0 : i32
    %c0_i32_0 = arith.constant 0 : i32
    %c0_i32_1 = arith.constant 0 : i32
    return %c0_i32, %c0_i32_0 : i32, i32
  }
}

</mosaic_0001>

<bundles_post_ra>
// kernel: tpu_custom_call.1
= control target key start
LH: loop header
LB: loop body
LE: loop exit
PB: predicated region body
PF: predicated region fallthrough
CT: control target
= control target key end

     0   :  { %9 = vsyncpa [#allocation4], 0  ;;  %s1135_s0 = inlined_call_operand.hbm [shape: f32[2,8,256], index: 0, kind: input, shape index: {}]   ;;  %s1136_s1 = inlined_call_operand.vmem [shape: f32[8,72], index: 1, kind: input, shape index: {}]   ;;  %s1137_s2 = inlined_call_operand.hbm [shape: f32[9,256], index: 2, kind: input, shape index: {}]   ;;  %s1138_s3 = inlined_call_operand.vmem [shape: f32[8,2], index: 3, kind: input, shape index: {}]   ;;  %s1139_s4 = inlined_call_operand.hbm [shape: f32[8,512], index: 4, kind: output, shape index: {}]  }
   0x1   :  { %11 = vsyncpa [#allocation4 + $0x1], 0 }
   0x2   :  { %12 = vsyncpa [#allocation7], 0 }
   0x3   :  { %13 = vsyncpa [#allocation5], 0  ;;  %s908_s15 = smov 0   ;;  %s910_s16 = smov 0  }
   0x4   :  { %s912_s17 = smov 0   ;;  %s914_s18 = smov 0  }
   0x5 LB: > { %s927_s19 = sadd.s32 4294967295, %s864_s18   ;;  %p39_p0 = scmp.ne.s32.totalorder %s856_s16, %s852_s15  ;;  %s864_s18 = sphi %s914_s18, %s1154_s18   ;;  %s860_s17 = sphi %s912_s17, %s1153_s17   ;;  %s856_s16 = sphi %s910_s16, %s1152_s16   ;;  %s852_s15 = sphi %s908_s15, %s1151_s15  }
   0x6   : > { %p1140_p1 = scmp.eq.s32.totalorder %s927_s19, 0  ;;  %p629_p2 = scmp.ge.s32.totalorder %s864_s18, 1 }
   0x7   : > { %p134_p3 = scmp.lt.s32.totalorder %s864_s18, 3  ;;  %s866_s22 = smov [#allocation6]  }
   0x8   : > { %p935_p4 = por %p1140_p1, %p39_p0  ;;  %s149_s23 = sshll.u32 %s866_s22, 4  ;;  %s150_s23 = int_to_ptr.vmem [resolvable:$true] %s149_s23 }
   0x9   : > { %p939_p5 = pnand %p629_p2, %p134_p3  ;;  %s952_s25 = sadd.s32 1, %s864_s18  }
   0xa   : > { %s1143_s20 = scalar_select %p935_p4, 1, 0 }
   0xb   : > { %s1144_s21 = scalar_select %p939_p5, 1, 0 }
   0xc   : > { %p673_p6 = pneg %p939_p5  ;;  %s26_s26 = sadd.s32 1, %s860_s17 }
   0xd   : > { %s23_s27 = ssub.s32 %s864_s18, %s952_s25  ;;  %s738_s30 = scalar_lea.hbm %s1137_s2, 512 }
   0xe   : > { %p947_p7 = pnand %p673_p6, %p1140_p1  ;;  %p739_p8 = scmp.ne.s32.totalorder %s1137_s2, %s738_s30 }
   0xf   : > { %p745_p12 = scmp.lt.u32.totalorder %s738_s30, %s1137_s2 }
  0x10   : > { %p740_p9 = pneg %p947_p7 }
  0x12   : > { %p741_p10 = pnand %p740_p9, %p739_p8 }
  0x14   : > { %p742_p11 = pneg %p741_p10 }
  0x16   : > { %p747_p13 = pnand %p745_p12, %p742_p11 }
  0x18   : > { %750 = shalt.err (!%p747_p13)
}
  0x19   : > { %s751_s9 = scalar_lea.vmem %s150_s23, 512  ;;  %p759_p6 = scmp.lt.s32.totalorder %s150_s23, %s150_s23 }
  0x1a   : > { %p752_p0 = scmp.ne.s32.totalorder %s150_s23, %s751_s9  ;;  %p760_p1 = scmp.lt.s32.totalorder %s751_s9, %s751_s9 }
  0x1c   : > { %p754_p2 = pnand %p752_p0, %p740_p9  ;;  %p761_p4 = por %p760_p1, %p759_p6 }
  0x1e   : > { %p755_p3 = pneg %p754_p2 }
  0x20   : > { %p762_p5 = pnand %p761_p4, %p755_p3 }
  0x22   : > { %765 = shalt.err (!%p762_p5)
}
  0x23   : > { %s867_s10 = smov 256   ;;  %s868_s11 = smov 16  }
  0x24   : > { %676 = dma.hbm_to_vmem [thread:$0]  (!%p947_p7), %s1137_s2, 512, %s150_s23, [#allocation7], %s867_s10, %s867_s10, %s868_s11  }
  0x25   : > { %p24_p8 = scmp.eq.s32.totalorder %s23_s27, 0  ;;  %p33_p9 = scmp.ne.s32.totalorder %s860_s17, %s856_s16 }
  0x26   : > { %p34_p1 = scmp.eq.s32.totalorder %s864_s18, 0  ;;  %p682_p4 = scmp.lt.s32.totalorder %s864_s18, 2 }
  0x27   : > { %s978_s14 = scalar_select %p24_p8, %s860_s17, %s26_s26  }
  0x28   : > { %p35_p5 = por %p34_p1, %p33_p9  ;;  %s166_s15 = sand.u32 1, %s860_s17  }
  0x29   : > { %s632_s22 = sshll.u32 %s166_s15, 4  ;;  %s646_s28 = sshll.u32 %s864_s18, 8 }
  0x2a   : > { %s985_s5 = scalar_lea.hbm %s1135_s0, %s646_s28  ;;  %s170_s23 = scalar_lea.vmem [#allocation3], %s632_s22 }
  0x2b   : > { %s178_s24 = sshll.u32 %s170_s23, 4  ;;  %p989_p7 = pnand %p682_p4, %p35_p5  ;;  %s987_s24 = int_to_ptr.vmem [resolvable:$true] %s178_s24 }
  0x2c   : > { %s167_s18 = scalar_lea.sflag [#allocation4], %s166_s15  ;;  %s766_s27 = scalar_lea.hbm %s985_s5, 256 }
  0x2d   : > { %p767_p10 = scmp.ne.s32.totalorder %s985_s5, %s766_s27  ;;  %p768_p11 = pneg %p989_p7 }
  0x2e   : > { %s771_s8 = scalar_lea.hbm %s1135_s0, 512  ;;  %p772_p0 = scmp.lt.u32.totalorder %s985_s5, %s1135_s0 }
  0x2f   : > { %p769_p12 = pnand %p768_p11, %p767_p10  ;;  %p773_p2 = scmp.lt.u32.totalorder %s771_s8, %s766_s27 }
  0x30   : > { %p775_p6 = scmp.lt.u32.totalorder %s766_s27, %s985_s5 }
  0x31   : > { %p770_p13 = pneg %p769_p12  ;;  %p774_p3 = por %p773_p2, %p772_p0 }
  0x33   : > { %p776_p8 = por %p775_p6, %p774_p3 }
  0x35   : > { %p777_p9 = pnand %p776_p8, %p770_p13 }
  0x37   : > { %780 = shalt.err (!%p777_p9)
}
  0x38   : > { %s781_s11 = scalar_lea.vmem %s987_s24, 256  ;;  %s869_s12 = smov [#allocation3]  }
  0x39   : > { %p782_p1 = scmp.ne.s32.totalorder %s987_s24, %s781_s11  ;;  %s786_s13 = sshll.u32 %s869_s12, 4  ;;  %s787_s13 = int_to_ptr.vmem [resolvable:$false] %s786_s13 }
  0x3a   : > { %s788_s15 = scalar_lea.vmem %s787_s13, 512  ;;  %p789_p10 = scmp.lt.s32.totalorder %s987_s24, %s787_s13 }
  0x3b   : > { %p784_p4 = pnand %p782_p1, %p768_p11  ;;  %p790_p12 = scmp.lt.s32.totalorder %s788_s15, %s781_s11 }
  0x3d   : > { %p785_p5 = pneg %p784_p4  ;;  %p791_p0 = por %p790_p12, %p789_p10 }
  0x3f   : > { %p792_p2 = pnand %p791_p0, %p785_p5 }
  0x41   : > { %795 = shalt.err (!%p792_p2)
}
  0x42   : > { %680 = dma.hbm_to_vmem [thread:$0]  (!%p989_p7), %s985_s5, 256, %s987_s24, %s167_s18  }
  0x43   : > { %p1147_p13 = scmp.ne.s32.totalorder %s1144_s21, 0 }
  0x44   : > { %s189_s22 = sand.u32 (!%p1147_p13), 1, %s856_s16   ;;  %p1148_p11 = scmp.ne.s32.totalorder (!%p1147_p13), %s1143_s20, 0 }
  0x45   : > { %187 = sbr.rel (%p1147_p13) target bundleno = 1049 (0x419), region = 36  ;;  %s636_s28 = sshll.u32 (!%p1147_p13), %s189_s22, 4 }
  0x46   : > { %s190_s29 = scalar_lea.sflag (!%p1147_p13), [#allocation4], %s189_s22  ;;  %s193_s30 = scalar_lea.vmem (!%p1147_p13), [#allocation3], %s636_s28 }
  0x4c   : > { %839 = dma.done.wait (%p1148_p11), %s190_s29, 256  }
  0x4d   : > { %841 = vsyncadd (%p1148_p11), %s190_s29, 4294967040  ;;  %p1149_p3 = scmp.eq.s32.totalorder %s927_s19, 0 }
  0x4f   : > { %843 = dma.done.wait (%p1149_p3), [#allocation7], 512   ;;  %p1150_p6 = pmov %p1149_p3 }
  0x50   : > { %v1029_v0 = vld [vmem:[%s193_s30] sm:$0xff]  ;;  %s870_s21 = smov 16   ;;  %s871_s5 = smov 17   ;;  %v1033_v1 = vld [vmem:[%s193_s30 + $0x8] sm:$0xff]  ;;  %v876_v2 = vmov 0.0   ;;  %v223_v3 = vlaneseq  ;;  %vm412_vm8 = vcmask 588800  }
  0x51   : > { %845 = vsyncadd (%p1150_p6), [#allocation7], 4294966784  ;;  %242 = vrot.lane.b32.xlu1 %v1029_v0, %s870_s21  ;;  %219 = vrot.lane.b32.xlu0 %v1029_v0, %s871_s5  ;;  %s872_s20 = smov 15   ;;  %s873_s23 = smov 1  }
  0x52   : > { %s874_s24 = smov 127   ;;  %s875_s26 = smov 113   ;;  %480 = vmatprep.mubr.f32.mxu0 %v876_v2  ;;  %v231_v4 = vshrl.u32 %v223_v3, 7  ;;  %v1049_v5 = vand.u32 127, %v223_v3 }
  0x53   : > { %s877_s18 = smov 112   ;;  %s878_s27 = smov 111   ;;  %v250_v8 = vld [vmem:[#allocation6 + $0x1] ss:$8 sm:$0x3] }
  0x54   : > { %v1051_v6 = vsub.s32 0, %v231_v4  ;;  %v1053_v7 = vsub.s32 1, %v231_v4  ;;  %v228_v9 = vld [vmem:[#allocation6] ss:$8 sm:$0x3]  ;;  %vm246_vm0 = vcmp.lt.s32.totalorder %v1049_v5, 16 }
  0x55   : > { %244 = vrot.lane.b32.xlu1 %v1033_v1, %s870_s21  ;;  %221 = vrot.lane.b32.xlu0 %v1033_v1, %s871_s5  ;;  %vm225_vm1 = vcmp.lt.s32.totalorder %v1049_v5, 17  ;;  %v272_v26 = vld [vmem:[#allocation6 + $0x2] ss:$8 sm:$0x3]  ;;  %vm268_vm2 = vcmp.lt.s32.totalorder %v1049_v5, 15  ;;  %vm290_vm3 = vcmp.lt.s32.totalorder %v1049_v5, 1 }
  0x56   : > { %v255_v12 = vrot.slane %v250_v8, %v1051_v6  ;;  %v233_v13 = vrot.slane %v228_v9, %v1051_v6  ;;  %v237_v14 = vrot.slane %v228_v9, %v1053_v7  ;;  %v259_v15 = vrot.slane %v250_v8, %v1053_v7  ;;  %v294_v27 = vld [vmem:[#allocation6 + $0x3] ss:$8 sm:$0x3]  ;;  %v309_v32 = vld [vmem:[#allocation6 + $0x4] ss:$8 sm:$0x3] }
  0x57   : > { %v277_v33 = vrot.slane %v272_v26, %v1051_v6  ;;  %v281_v34 = vrot.slane %v272_v26, %v1053_v7  ;;  %v299_v35 = vrot.slane %v294_v27, %v1051_v6  ;;  %v303_v36 = vrot.slane %v294_v27, %v1053_v7  ;;  %v331_v37 = vld [vmem:[#allocation6 + $0x5] ss:$8 sm:$0x3]  ;;  %v353_v62 = vld [vmem:[#allocation6 + $0x6] ss:$8 sm:$0x3] }
  0x58   : > { %vm327_vm4 = vcmp.lt.s32.totalorder %v1049_v5, 127  ;;  %v318_v42 = vrot.slane %v309_v32, %v1053_v7  ;;  %v314_v43 = vrot.slane %v309_v32, %v1051_v6  ;;  %v336_v46 = vrot.slane %v331_v37, %v1051_v6  ;;  %v375_v63 = vld [vmem:[#allocation6 + $0x7] ss:$8 sm:$0x3]  ;;  %s639_s8 = sshll.u32 %s927_s19, 8  ;;  %p641_p7 = scmp.ne.s32.totalorder %s927_s19, 1 }
  0x59   : > { %266 = vrot.lane.b32.xlu1 %v1033_v1, %s872_s20  ;;  %264 = vrot.lane.b32.xlu0 %v1029_v0, %s872_s20  ;;  %v340_v47 = vrot.slane %v331_v37, %v1053_v7  ;;  %vm349_vm5 = vcmp.lt.s32.totalorder %v1049_v5, 113  ;;  %v362_v8 = vrot.slane %v353_v62, %v1053_v7  ;;  %vm371_vm6 = vcmp.lt.s32.totalorder %v1049_v5, 112  ;;  %s488_s9 = sshra.s32 %s639_s8, 7  ;;  %s881_s15 = smov (!%p641_p7), 1  }
  0x5a   : > { %v322_v56 = vmul.f32 %v318_v42, %v1033_v1  ;;  %v321_v57 = vmul.f32 %v314_v43, %v1029_v0  ;;  %v380_v9 = vrot.slane %v375_v63, %v1051_v6  ;;  %vm393_vm7 = vcmp.lt.s32.totalorder %v1049_v5, 111  ;;  %v411_v5 = vld [vmem:[%s1136_s1] sm:$0xff]  ;;  %s640_s10 = sshll.u32 %s488_s9, 3 }
  0x5b   : > { %s491_s11 = scalar_lea.vmem [#allocation2], %s640_s10 }
  0x5d   : > { %288 = vrot.lane.b32.xlu1 %v1033_v1, %s873_s23  ;;  %286 = vrot.lane.b32.xlu0 %v1029_v0, %s873_s23 }
  0x61   : > { %325 = vrot.lane.b32.xlu1 %v1033_v1, %s874_s24  ;;  %323 = vrot.lane.b32.xlu0 %v1029_v0, %s874_s24 }
  0x65   : > { %347 = vrot.lane.b32.xlu1 %v1033_v1, %s875_s26  ;;  %345 = vrot.lane.b32.xlu0 %v1029_v0, %s875_s26 }
  0x69   : > { %369 = vrot.lane.b32.xlu1 %v1033_v1, %s877_s18  ;;  %367 = vrot.lane.b32.xlu0 %v1029_v0, %s877_s18 }
  0x6d   : > { %391 = vrot.lane.b32.xlu1 %v1033_v1, %s878_s27  ;;  %389 = vrot.lane.b32.xlu0 %v1029_v0, %s878_s27  ;;  %v358_v0 = vrot.slane %v353_v62, %v1051_v6 }
  0xc3   : > { %v243_v10 = vpop.permute.xlu1 %242  ;;  %v220_v11 = vpop.permute.xlu0 %219 }
  0xc7   : > { %v245_v16 = vpop.permute.xlu1 %244  ;;  %v222_v17 = vpop.permute.xlu0 %221 }
  0xc8   : > { %v247_v18 = vsel %vm246_vm0, %v243_v10, %v245_v16  ;;  %v248_v19 = vsel %vm246_vm0, %v245_v16, %v243_v10  ;;  %v226_v20 = vsel %vm225_vm1, %v220_v11, %v222_v17  ;;  %v227_v21 = vsel %vm225_vm1, %v222_v17, %v220_v11  ;;  %v397_v11 = vld [vmem:[#allocation6 + $0x10] ss:$8 sm:$0x3] }
  0xc9   : > { %v262_v22 = vmul.f32 %v255_v12, %v248_v19  ;;  %v240_v23 = vmul.f32 %v233_v13, %v227_v21  ;;  %v241_v24 = vmul.f32 %v237_v14, %v226_v20  ;;  %v263_v25 = vmul.f32 %v259_v15, %v247_v18 }
  0xca   : > { %v384_v10 = vrot.slane %v375_v63, %v1053_v7  ;;  %v406_v18 = vrot.slane %v397_v11, %v1053_v7 }
  0xcb   : > { %v267_v28 = vpop.permute.xlu1 %266  ;;  %v265_v29 = vpop.permute.xlu0 %264  ;;  %v647_v30 = vpack.c.bf16 %v263_v25, %v241_v24  ;;  %v649_v31 = vpack.c.bf16 %v262_v22, %v240_v23  ;;  %v402_v23 = vrot.slane %v397_v11, %v1051_v6 }
  0xcc   : > { %v269_v38 = vsel %vm268_vm2, %v265_v29, %v267_v28  ;;  %v270_v39 = vsel %vm268_vm2, %v267_v28, %v265_v29 }
  0xcd   : > { %648 = vmatprep.subr.bf16.mxu0 %v647_v30  ;;  %v284_v48 = vmul.f32 %v277_v33, %v270_v39  ;;  %v285_v49 = vmul.f32 %v281_v34, %v269_v38 }
  0xce   : > { %650 = vmatpush1.bf16.msra.mxu0 %v649_v31 }
  0xcf   : > { %v289_v40 = vpop.permute.xlu1 %288  ;;  %v287_v41 = vpop.permute.xlu0 %286 }
  0xd0   : > { %v291_v44 = vsel %vm290_vm3, %v287_v41, %v289_v40  ;;  %v292_v45 = vsel %vm290_vm3, %v289_v40, %v287_v41 }
  0xd1   : > { %v306_v50 = vmul.f32 %v299_v35, %v292_v45  ;;  %v307_v51 = vmul.f32 %v303_v36, %v291_v44 }
  0xd3   : > { %v326_v52 = vpop.permute.xlu1 %325  ;;  %v324_v53 = vpop.permute.xlu0 %323  ;;  %v651_v54 = vpack.c.bf16 %v307_v51, %v285_v49  ;;  %v653_v55 = vpack.c.bf16 %v306_v50, %v284_v48 }
  0xd4   : > { %v328_v58 = vsel %vm327_vm4, %v324_v53, %v326_v52  ;;  %v329_v59 = vsel %vm327_vm4, %v326_v52, %v324_v53  ;;  %v879_v52 = vmov (!%p641_p7), 0  }
  0xd5   : > { %v343_v60 = vmul.f32 %v336_v46, %v328_v58  ;;  %v344_v61 = vmul.f32 %v340_v47, %v329_v59  ;;  %652 = vmatprep.subr.bf16.mxu0 %v651_v54  ;;  %734 = vset.pattern.permute.xlu1 (!%p641_p7), %v879_v52 }
  0xd6   : > { %654 = vmatpush1.bf16.msra.mxu0 %v653_v55 }
  0xd7   : > { %v348_v2 = vpop.permute.xlu1 %347  ;;  %v346_v3 = vpop.permute.xlu0 %345  ;;  %v655_v4 = vpack.c.bf16 %v344_v61, %v322_v56  ;;  %v657_v1 = vpack.c.bf16 %v343_v60, %v321_v57  ;;  %v880_v56 = vmov (!%p641_p7), 1   ;;  %v523_v57 = vld [vmem:[%s1138_s3] sm:$0xff] (!%p641_p7) }
  0xd8   : > { %v350_v12 = vsel %vm349_vm5, %v346_v3, %v348_v2  ;;  %v351_v13 = vsel %vm349_vm5, %v348_v2, %v346_v3  ;;  %735 = vset.pattern.permute.xlu0 (!%p641_p7), %v880_v56 }
  0xd9   : > { %656 = vmatprep.subr.bf16.mxu0 %v655_v4  ;;  %v365_v19 = vmul.f32 %v358_v0, %v350_v12  ;;  %v366_v20 = vmul.f32 %v362_v8, %v351_v13 }
  0xda   : > { %658 = vmatpush1.bf16.msra.mxu0 %v657_v1 }
  0xdb   : > { %v370_v14 = vpop.permute.xlu1 %369  ;;  %v368_v15 = vpop.permute.xlu0 %367 }
  0xdc   : > { %v372_v16 = vsel %vm371_vm6, %v368_v15, %v370_v14  ;;  %v373_v17 = vsel %vm371_vm6, %v370_v14, %v368_v15 }
  0xdd   : > { %v387_v21 = vmul.f32 %v380_v9, %v372_v16  ;;  %v388_v22 = vmul.f32 %v384_v10, %v373_v17 }
  0xdf   : > { %v392_v24 = vpop.permute.xlu1 %391  ;;  %v390_v25 = vpop.permute.xlu0 %389  ;;  %v659_v26 = vpack.c.bf16 %v388_v22, %v366_v20  ;;  %v661_v27 = vpack.c.bf16 %v387_v21, %v365_v19 }
  0xe0   : > { %v394_v28 = vsel %vm393_vm7, %v390_v25, %v392_v24  ;;  %v395_v29 = vsel %vm393_vm7, %v392_v24, %v390_v25 }
  0xe1   : > { %v410_v30 = vmul.f32 %v406_v18, %v395_v29  ;;  %660 = vmatprep.subr.bf16.mxu0 %v659_v26  ;;  %v409_v31 = vmul.f32 %v402_v23, %v394_v28 }
  0xe2   : > { %662 = vmatpush1.bf16.msra.mxu0 %v661_v27 }
  0xe3   : > { %432 = vmatprep.subr.mxu0 %v410_v30 }
  0xe6   : > { %433 = vmatpush1.msra.mxu0 %v409_v31 }
  0xe7   : > { %638 = vmatmul.mubr.msk.f32.vlgmr.msra.gmra.mrb[0].mxu0 %vm412_vm8, %v411_v5 }
 0x1b6   : > { %497 = sbr.rel (%p641_p7) target bundleno = 1024 (0x400), region = 48 }
 0x1ba   : > { %v482_v6 = vpop.f32.mrb[0].mxu0 }
 0x1bb   : > { %492 = vst [vmem:[%s491_s11] sm:$0xff] %v482_v6  ;;  %v484_v7 = vpop.f32.mrb[1].mxu0 }
 0x1bc   : > { %493 = vst [vmem:[%s491_s11 + $0x8] sm:$0xff] %v484_v7 }
 0x1c3   : > { %v498_v32 = vld [vmem:[#allocation2] sm:$0xff]  ;;  %v499_v33 = vld [vmem:[#allocation2 + $0x8] sm:$0xff]  ;;  %v500_v34 = vld [vmem:[#allocation2 + $0x10] sm:$0xff] }
 0x1c4   : > { %v502_v35 = vadd.f32 %v499_v33, %v498_v32  ;;  %v501_v36 = vld [vmem:[#allocation2 + $0x18] sm:$0xff] }
 0x1c6   : > { %v503_v37 = vadd.f32 %v502_v35, %v500_v34 }
 0x1c8   : > { %v504_v38 = vadd.f32 %v503_v37, %v501_v36 }
 0x1ca   : > { %505 = vadd.xlane.f32.xlu0 %v504_v38 }
 0x257   : > { %v506_v39 = vpop.xlane.xlu0 %505 }
 0x258   : > { %v508_v40 = vmul.f32 0.001953125, %v506_v39 }
 0x25a   : > { %v509_v41 = vsub.f32 %v498_v32, %v508_v40  ;;  %v510_v42 = vsub.f32 %v499_v33, %v508_v40  ;;  %v511_v43 = vsub.f32 %v500_v34, %v508_v40  ;;  %v512_v44 = vsub.f32 %v501_v36, %v508_v40 }
 0x25c   : > { %v513_v45 = vmul.f32 %v509_v41, %v509_v41  ;;  %v514_v46 = vmul.f32 %v510_v42, %v510_v42  ;;  %v515_v47 = vmul.f32 %v511_v43, %v511_v43  ;;  %v516_v49 = vmul.f32 %v512_v44, %v512_v44 }
 0x25e   : > { %v517_v48 = vadd.f32 %v514_v46, %v513_v45 }
 0x260   : > { %v518_v50 = vadd.f32 %v517_v48, %v515_v47 }
 0x262   : > { %v519_v51 = vadd.f32 %v518_v50, %v516_v49 }
 0x264   : > { %520 = vadd.xlane.f32.xlu0 %v519_v51 }
 0x2f1   : > { %v521_v53 = vpop.xlane.xlu0 %520 }
 0x2f2   : > { %v522_v54 = vmul.f32 0.001953125, %v521_v53 }
 0x2f4   : > { %v524_v55 = vadd.f32 1e-05, %v522_v54 }
 0x2f6   : > { %736 = vrsqrt.f32 %v524_v55 }
 0x300   : > { %v737_v58 = vpop.eup %736 }
 0x301   : > { %v526_v59 = vmul.f32 %v737_v58, %v523_v57 }
 0x303   : > { %v527_v60 = vmul.f32 %v526_v59, %v508_v40 }
 0x305   : > { %529 = vrot.lane.b32.xlu1 %v527_v60, %s881_s15 }
 0x309   : > { %535 = vperm.xlu1 %734, %v526_v59  }
 0x377   : > { %v530_v61 = vpop.permute.xlu1 %529 }
 0x378   : > { %v532_v62 = vsub.f32 %v523_v57, %v530_v61 }
 0x37a   : > { %544 = vperm.xlu0 %735, %v532_v62  }
 0x388   : > { %v536_v63 = vpop.permute.xlu1 %535 }
 0x389   : > { %v538_v2 = vmul.f32 %v536_v63, %v498_v32  ;;  %v539_v3 = vmul.f32 %v536_v63, %v499_v33  ;;  %v540_v4 = vmul.f32 %v536_v63, %v500_v34  ;;  %v541_v1 = vmul.f32 %v536_v63, %v501_v36 }
 0x3f9   : > { %v545_v0 = vpop.permute.xlu0 %544 }
 0x3fa   : > { %v547_v8 = vadd.f32 %v545_v0, %v538_v2  ;;  %v548_v9 = vadd.f32 %v545_v0, %v539_v3  ;;  %v549_v10 = vadd.f32 %v545_v0, %v540_v4  ;;  %v550_v11 = vadd.f32 %v545_v0, %v541_v1 }
 0x3fc   : > { %v551_v12 = vmax.f32 %v547_v8, 0.0  ;;  %v552_v13 = vmax.f32 %v548_v9, 0.0  ;;  %v553_v14 = vmax.f32 %v549_v10, 0.0  ;;  %v554_v15 = vmax.f32 %v550_v11, 0.0 }
 0x3fe   : > { %555 = vst [vmem:[#allocation8] sm:$0xff] %v551_v12  ;;  %556 = vst [vmem:[#allocation8 + $0x8] sm:$0xff] %v552_v13 }
 0x3ff   : > { %557 = vst [vmem:[#allocation8 + $0x10] sm:$0xff] %v553_v14  ;;  %558 = vst [vmem:[#allocation8 + $0x18] sm:$0xff] %v554_v15 }
 0x400 PF: > { %p684_p8 = scmp.eq.s32.totalorder %s927_s19, 1  ;;  %s882_s22 = smov [#allocation8]  }
 0x401   : > { %s566_s28 = sshll.u32 %s882_s22, 4  ;;  %s567_s28 = int_to_ptr.vmem [resolvable:$true] %s566_s28 }
 0x402   : > { %s796_s29 = scalar_lea.vmem %s567_s28, 512  ;;  %p803_p5 = scmp.lt.s32.totalorder %s567_s28, %s567_s28 }
 0x403   : > { %p797_p9 = scmp.ne.s32.totalorder %s567_s28, %s796_s29  ;;  %p804_p10 = scmp.lt.s32.totalorder %s796_s29, %s796_s29 }
 0x405   : > { %p798_p1 = pnand %p797_p9, %p684_p8  ;;  %p805_p12 = por %p804_p10, %p803_p5 }
 0x407   : > { %p799_p4 = pneg %p798_p1 }
 0x409   : > { %p806_p0 = pnand %p805_p12, %p799_p4 }
 0x40b   : > { %809 = shalt.err (!%p806_p0)
}
 0x40c   : > { %s810_s5 = scalar_lea.hbm %s1139_s4, 512 }
 0x40d   : > { %p811_p2 = scmp.ne.s32.totalorder %s1139_s4, %s810_s5  ;;  %p816_p3 = scmp.lt.u32.totalorder %s810_s5, %s1139_s4 }
 0x40f   : > { %p812_p13 = pnand %p811_p2, %p684_p8 }
 0x411   : > { %p813_p11 = pneg %p812_p13 }
 0x413   : > { %p818_p6 = pnand %p816_p3, %p813_p11 }
 0x415   : > { %821 = shalt.err (!%p818_p6)
}
 0x416   : > { %670 = dma.vmem_to_hbm [thread:$0]  (%p684_p8), %s567_s28, 512, %s1139_s4, [#allocation5]  }
 0x417   : > { %847 = dma.done.wait (%p684_p8), [#allocation5], 512  }
 0x418   : > { %849 = vsyncadd (%p684_p8), [#allocation5], 4294966784 }
 0x419 PF: > { %p16_p7 = scmp.ge.s32.totalorder %s952_s25, 4   ;;  %s1151_s15 = smov %s856_s16 }
 0x41a   : > { %s1152_s16 = smov %s860_s17  ;;  %s1153_s17 = smov %s978_s14 }
 0x41b   : > { %s1154_s18 = smov %s952_s25  ;;  %18 = sbr.rel (!%p16_p7) target bundleno = 5 (0x5), region = 90 }
 0x422   :  { %579 = vsyncpa [#allocation4], 1 }
 0x423   :  { %581 = vsyncpa [#allocation4 + $0x1], 1 }
 0x424   :  { %582 = vsyncpa [#allocation7], 1 }
 0x425   :  { %583 = vsyncpa [#allocation5], 1 }
 0x426   :  { %585 = vsyncpa [#allocation5 + $0x1], 1 }

</bundles_post_ra>
